<compile_context>
chip_gen: v7x
topology: tpu7x:2x2x1
jax: 0.10.0
libtpu: 0.0.40
codegen_flags: <defaults>
</compile_context>

<pallas_src>
import functools

import jax
import jax.numpy as jnp
from jax import lax
from jax.experimental import pallas as pl
from jax.experimental.pallas import tpu as pltpu


def _round_up(v, m):
    return ((v + m - 1) // m) * m


def _pick_block_rows(m, requested):
    """Row-tile size: multiple of 8, and (when m allows) at least 2 tiles so
    the grid has >=2 'parallel' steps (keeps both TensorCores busy on v7x)."""
    bm = min(requested, _round_up(pl.cdiv(m, 2), 8))
    return max(bm, 8)


# --------------------------------------------------------------------------
# Fused QKV projection (self-attention): one matmul-source read, 3 outputs
# --------------------------------------------------------------------------
def _qkv_proj_kernel(x_ref, wq_ref, wk_ref, wv_ref, bq_ref, bk_ref, bv_ref,
                     q_ref, k_ref, v_ref):
    x = x_ref[...]
    q_ref[...] = (jnp.dot(x, wq_ref[...], preferred_element_type=jnp.float32)
                  + bq_ref[...].astype(jnp.float32)).astype(q_ref.dtype)
    k_ref[...] = (jnp.dot(x, wk_ref[...], preferred_element_type=jnp.float32)
                  + bk_ref[...].astype(jnp.float32)).astype(k_ref.dtype)
    v_ref[...] = (jnp.dot(x, wv_ref[...], preferred_element_type=jnp.float32)
                  + bv_ref[...].astype(jnp.float32)).astype(v_ref.dtype)


def qkv_projection(x, wq, wk, wv, bq, bk, bv, *, block_m=256):
    """x: [M, d_model] -> (q [M, H*d_k], k [M, H*d_k], v [M, H*d_v])."""
    M, K = x.shape
    Nq, Nv = wq.shape[1], wv.shape[1]
    bm = _pick_block_rows(M, block_m)
    grid_m = pl.cdiv(M, bm)
    M_pad = grid_m * bm
    if M_pad != M:
        x = jnp.pad(x, ((0, M_pad - M), (0, 0)))
    bq2, bk2, bv2 = bq.reshape(1, Nq), bk.reshape(1, Nq), bv.reshape(1, Nv)

    q, k, v = pl.pallas_call(
        _qkv_proj_kernel,
        out_shape=(jax.ShapeDtypeStruct((M_pad, Nq), x.dtype),
                   jax.ShapeDtypeStruct((M_pad, Nq), x.dtype),
                   jax.ShapeDtypeStruct((M_pad, Nv), x.dtype)),
        grid=(grid_m,),
        in_specs=[
            pl.BlockSpec((bm, K), lambda i: (i, 0)),
            pl.BlockSpec((K, Nq), lambda i: (0, 0)),
            pl.BlockSpec((K, Nq), lambda i: (0, 0)),
            pl.BlockSpec((K, Nv), lambda i: (0, 0)),
            pl.BlockSpec((1, Nq), lambda i: (0, 0)),
            pl.BlockSpec((1, Nq), lambda i: (0, 0)),
            pl.BlockSpec((1, Nv), lambda i: (0, 0)),
        ],
        out_specs=(
            pl.BlockSpec((bm, Nq), lambda i: (i, 0)),
            pl.BlockSpec((bm, Nq), lambda i: (i, 0)),
            pl.BlockSpec((bm, Nv), lambda i: (i, 0)),
        ),
        compiler_params=pltpu.CompilerParams(
            dimension_semantics=("parallel",)),
    )(x, wq, wk, wv, bq2, bk2, bv2)
    if M_pad != M:
        q, k, v = q[:M], k[:M], v[:M]
    return q, k, v


# --------------------------------------------------------------------------
# Generic linear (used for the cross-attention / distinct K,V path)
# --------------------------------------------------------------------------
def _linear_kernel(x_ref, w_ref, b_ref, o_ref):
    y = jnp.dot(x_ref[...], w_ref[...], preferred_element_type=jnp.float32)
    o_ref[...] = (y + b_ref[...].astype(jnp.float32)).astype(o_ref.dtype)


def linear(x, w, b, *, block_m=256):
    """x: [M, K], w: [K, N], b: [N] -> [M, N] (row-tiled, pl.cdiv + padding)."""
    M, K = x.shape
    N = w.shape[1]
    bm = _pick_block_rows(M, block_m)
    grid_m = pl.cdiv(M, bm)
    M_pad = grid_m * bm
    if M_pad != M:
        x = jnp.pad(x, ((0, M_pad - M), (0, 0)))
    out = pl.pallas_call(
        _linear_kernel,
        out_shape=jax.ShapeDtypeStruct((M_pad, N), x.dtype),
        grid=(grid_m,),
        in_specs=[
            pl.BlockSpec((bm, K), lambda i: (i, 0)),
            pl.BlockSpec((K, N), lambda i: (0, 0)),
            pl.BlockSpec((1, N), lambda i: (0, 0)),
        ],
        out_specs=pl.BlockSpec((bm, N), lambda i: (i, 0)),
        compiler_params=pltpu.CompilerParams(
            dimension_semantics=("parallel",)),
    )(x, w, b.reshape(1, N))
    return out[:M] if M_pad != M else out


# --------------------------------------------------------------------------
# Fused multi-head attention + output projection
# --------------------------------------------------------------------------
def _fused_mha_kernel(q_ref, k_ref, v_ref, wo_ref, bo_ref, o_ref, *maybe_attn,
                      n_heads, d_k, d_v, scale, return_attn):
    # q_ref : (1, tq, H*d_k)   k_ref : (1, Lk, H*d_k)   v_ref : (1, Lk, H*d_v)
    # wo_ref: (H*d_v, d_model) bo_ref: (1, d_model)     o_ref : (1, tq, d_model)
    # attn  : (1, H, tq, Lk) f32   (only when return_attn)
    attn_ref = maybe_attn[0] if return_attn else None
    tq = q_ref.shape[1]
    d_model = o_ref.shape[2]

    acc = jnp.zeros((tq, d_model), jnp.float32)
    # Static Python loop over heads -> all ref slices below are static views
    # (no head-split/merge transposes, no per-head HBM round trips).
    for h in range(n_heads):
        # Fold 1/sqrt(d_k) into q: O(tq*d_k) VALU instead of O(tq*Lk).
        q_h = q_ref[0, :, h * d_k:(h + 1) * d_k] * scale           # (tq, d_k)
        k_h = k_ref[0, :, h * d_k:(h + 1) * d_k]                   # (Lk, d_k)
        v_h = v_ref[0, :, h * d_v:(h + 1) * d_v]                   # (Lk, d_v)

        # Contract on the last dim of both operands (MXU handles this natively).
        s = lax.dot_general(q_h, k_h, (((1,), (1,)), ((), ())),
                            preferred_element_type=jnp.float32)    # (tq, Lk)
        m = jnp.max(s, axis=-1, keepdims=True)
        p = jnp.exp(s - m)
        denom = jnp.sum(p, axis=-1, keepdims=True)
        # EUP reciprocal + one Newton step: divide-free, ~f32-exact, O(tq) cost.
        inv = pl.reciprocal(denom, approx=True)
        inv = inv * (2.0 - denom * inv)
        attn = p * inv                                             # (tq, Lk) f32

        if return_attn:
            attn_ref[0, h, :, :] = attn.astype(attn_ref.dtype)

        ctx = jnp.dot(attn.astype(v_h.dtype), v_h,
                      preferred_element_type=jnp.float32)          # (tq, d_v)
        # Fused output projection: accumulate this head's contribution so the
        # only epilogue store is one lane-dense [tq, d_model] tile.
        wo_h = wo_ref[h * d_v:(h + 1) * d_v, :]                    # (d_v, d_model)
        acc = acc + jnp.dot(ctx.astype(wo_h.dtype), wo_h,
                            preferred_element_type=jnp.float32)

    o_ref[0, :, :] = (acc + bo_ref[...].astype(jnp.float32)).astype(o_ref.dtype)


def fused_attention(q, k, v, wo, bo, *, n_heads, d_k, d_v,
                    return_attn=True, block_q=256):
    """q: [bs, Lq, H*d_k], k: [bs, Lk, H*d_k], v: [bs, Lk, H*d_v].

    Returns (out [bs, Lq, d_model], attn [bs, H, Lq, Lk] f32 or None).
    """
    bs, Lq, Hdk = q.shape
    Lk = k.shape[1]
    Hdv = v.shape[2]
    d_model = wo.shape[1]
    scale = float(d_k) ** -0.5  # TODO(synk): trained lsa scale not supported.

    tq = min(block_q, _round_up(Lq, 8))
    grid_q = pl.cdiv(Lq, tq)
    Lq_pad = grid_q * tq
    if Lq_pad != Lq:
        q = jnp.pad(q, ((0, 0), (0, Lq_pad - Lq), (0, 0)))

    kernel = functools.partial(_fused_mha_kernel, n_heads=n_heads, d_k=d_k,
                               d_v=d_v, scale=scale, return_attn=return_attn)

    out_shape = [jax.ShapeDtypeStruct((bs, Lq_pad, d_model), q.dtype)]
    out_specs = [pl.BlockSpec((1, tq, d_model), lambda b, i: (b, i, 0))]
    if return_attn:
        # Kept in f32 (matches the f32 softmax; no precision loss for bf16 in).
        out_shape.append(jax.ShapeDtypeStruct((bs, n_heads, Lq_pad, Lk),
                                              jnp.float32))
        out_specs.append(pl.BlockSpec((1, n_heads, tq, Lk),
                                      lambda b, i: (b, 0, i, 0)))

    results = pl.pallas_call(
        kernel,
        out_shape=tuple(out_shape),
        grid=(bs, grid_q),
        in_specs=[
            pl.BlockSpec((1, tq, Hdk), lambda b, i: (b, i, 0)),
            pl.BlockSpec((1, Lk, Hdk), lambda b, i: (b, 0, 0)),
            pl.BlockSpec((1, Lk, Hdv), lambda b, i: (b, 0, 0)),
            pl.BlockSpec((Hdv, d_model), lambda b, i: (0, 0)),
            pl.BlockSpec((1, d_model), lambda b, i: (0, 0)),
        ],
        out_specs=tuple(out_specs),
        compiler_params=pltpu.CompilerParams(
            dimension_semantics=("parallel", "parallel"),
            vmem_limit_bytes=64 * 1024 * 1024),
    )(q, k, v, wo, bo.reshape(1, d_model))

    if return_attn:
        out, attn = results
    else:
        (out,) = results
        attn = None
    if Lq_pad != Lq:
        out = out[:, :Lq, :]
        if attn is not None:
            attn = attn[:, :, :Lq, :]
    return out, attn


# --------------------------------------------------------------------------
# Full multi-head attention forward
# --------------------------------------------------------------------------
def multihead_attention(Q, K=None, V=None, *, params, n_heads, d_k, d_v,
                        return_attn=True, block_m=256, block_q=256):
    """Forward of _MultiheadAttention (no masks, res_attention=False).

    Q, K, V : [bs, seq_len, d_model]
    params  : dict with pre-transposed nn.Linear weights
              wq/wk/wv: [d_model, H*d_k(or d_v)], bq/bk/bv: [H*d_*]
              wo: [H*d_v, d_model], bo: [d_model]
    returns : (output [bs, q_len, d_model],
               attn [bs, n_heads, q_len, seq_len] f32  (None if return_attn=False))
    """
    self_attn = (K is None or K is Q) and (V is None or V is Q)
    if K is None:
        K = Q
    if V is None:
        V = Q
    bs, Lq, d_model = Q.shape
    Lk = K.shape[1]

    if self_attn:
        # One kernel: x read once, three lane-dense projection outputs.
        q_p, k_p, v_p = qkv_projection(
            Q.reshape(bs * Lq, d_model),
            params["wq"], params["wk"], params["wv"],
            params["bq"], params["bk"], params["bv"], block_m=block_m)
    else:
        q_p = linear(Q.reshape(bs * Lq, d_model), params["wq"], params["bq"],
                     block_m=block_m)
        k_p = linear(K.reshape(bs * Lk, d_model), params["wk"], params["bk"],
                     block_m=block_m)
        v_p = linear(V.reshape(bs * Lk, d_model), params["wv"], params["bv"],
                     block_m=block_m)

    # Keep the lane-dense [bs, L, H*d] layout; heads are sliced in-kernel.
    q_p = q_p.reshape(bs, Lq, n_heads * d_k)
    k_p = k_p.reshape(bs, Lk, n_heads * d_k)
    v_p = v_p.reshape(bs, Lk, n_heads * d_v)

    out, attn = fused_attention(q_p, k_p, v_p, params["wo"], params["bo"],
                                n_heads=n_heads, d_k=d_k, d_v=d_v,
                                return_attn=return_attn, block_q=block_q)
    # attn_dropout / proj_dropout are identity at inference.
    return out, attn


# --------------------------------------------------------------------------
# Pure-JAX reference for verification
# --------------------------------------------------------------------------
def _reference_mha(Q, K, V, params, n_heads, d_k, d_v):
    bs, Lq, d_model = Q.shape
    Lk = K.shape[1]
    q = jnp.einsum("bld,dn->bln", Q, params["wq"]) + params["bq"]
    k = jnp.einsum("bld,dn->bln", K, params["wk"]) + params["bk"]
    v = jnp.einsum("bld,dn->bln", V, params["wv"]) + params["bv"]
    q = q.reshape(bs, Lq, n_heads, d_k).transpose(0, 2, 1, 3)
    k = k.reshape(bs, Lk, n_heads, d_k).transpose(0, 2, 1, 3)
    v = v.reshape(bs, Lk, n_heads, d_v).transpose(0, 2, 1, 3)
    scores = jnp.einsum("bhqd,bhkd->bhqk", q, k) * (float(d_k) ** -0.5)
    attn = jax.nn.softmax(scores, axis=-1)
    ctx = jnp.einsum("bhqk,bhkd->bhqd", attn, v)
    ctx = ctx.transpose(0, 2, 1, 3).reshape(bs, Lq, n_heads * d_v)
    out = jnp.einsum("bln,nd->bld", ctx, params["wo"]) + params["bo"]
    return out, attn


if __name__ == "__main__":
    # Small shapes consistent with the module: bs=2, seq=8, d_model=32, 4 heads.
    bs, seq_len, d_model, n_heads = 2, 8, 32, 4
    d_k = d_v = d_model // n_heads
    dtype = jnp.float32

    key = jax.random.PRNGKey(0)
    keys = jax.random.split(key, 11)

    Q = jax.random.normal(keys[0], (bs, seq_len, d_model), dtype=dtype)

    # nn.Linear weights stored pre-transposed as [in, out].
    params = {
        "wq": jax.random.normal(keys[1], (d_model, n_heads * d_k), dtype) * 0.1,
        "bq": jax.random.normal(keys[2], (n_heads * d_k,), dtype) * 0.1,
        "wk": jax.random.normal(keys[3], (d_model, n_heads * d_k), dtype) * 0.1,
        "bk": jax.random.normal(keys[4], (n_heads * d_k,), dtype) * 0.1,
        "wv": jax.random.normal(keys[5], (d_model, n_heads * d_v), dtype) * 0.1,
        "bv": jax.random.normal(keys[6], (n_heads * d_v,), dtype) * 0.1,
        "wo": jax.random.normal(keys[7], (n_heads * d_v, d_model), dtype) * 0.1,
        "bo": jax.random.normal(keys[8], (d_model,), dtype) * 0.1,
    }

    # 1) Self-attention (fused QKV) with attention weights returned.
    out, attn = multihead_attention(Q, params=params, n_heads=n_heads,
                                    d_k=d_k, d_v=d_v)
    jax.block_until_ready(out)
    jax.block_until_ready(attn)
    ref_out, ref_attn = _reference_mha(Q, Q, Q, params, n_heads, d_k, d_v)
    assert out.shape == (bs, seq_len, d_model)
    assert attn.shape == (bs, n_heads, seq_len, seq_len)
    assert jnp.allclose(out, ref_out, atol=5e-4, rtol=5e-4)
    assert jnp.allclose(attn, ref_attn, atol=5e-4, rtol=5e-4)

    # 2) Fast path: skip the O(L^2) attention-probability writeback.
    out_na, attn_na = multihead_attention(Q, params=params, n_heads=n_heads,
                                          d_k=d_k, d_v=d_v, return_attn=False)
    jax.block_until_ready(out_na)
    assert attn_na is None
    assert jnp.allclose(out_na, ref_out, atol=5e-4, rtol=5e-4)

    # 3) Cross-attention path (distinct K / V arrays -> separate projections).
    K_in = jax.random.normal(keys[9], (bs, seq_len, d_model), dtype=dtype)
    V_in = jax.random.normal(keys[10], (bs, seq_len, d_model), dtype=dtype)
    out_x, attn_x = multihead_attention(Q, K_in, V_in, params=params,
                                        n_heads=n_heads, d_k=d_k, d_v=d_v)
    jax.block_until_ready(out_x)
    ref_out_x, ref_attn_x = _reference_mha(Q, K_in, V_in, params,
                                           n_heads, d_k, d_v)
    assert jnp.allclose(out_x, ref_out_x, atol=5e-4, rtol=5e-4)
    assert jnp.allclose(attn_x, ref_attn_x, atol=5e-4, rtol=5e-4)

    print("KERNEL_OK")
</pallas_src>

<mosaic_0001>
module attributes {stable_mosaic.version = 11 : i64} {
  func.func @_qkv_proj_kernel(%arg0: i32, %arg1: memref<8x32xf32, #tpu.memory_space<vmem>>, %arg2: memref<32x32xf32, #tpu.memory_space<vmem>>, %arg3: memref<32x32xf32, #tpu.memory_space<vmem>>, %arg4: memref<32x32xf32, #tpu.memory_space<vmem>>, %arg5: memref<1x32xf32, #tpu.memory_space<vmem>>, %arg6: memref<1x32xf32, #tpu.memory_space<vmem>>, %arg7: memref<1x32xf32, #tpu.memory_space<vmem>>, %arg8: memref<8x32xf32, #tpu.memory_space<vmem>>, %arg9: memref<8x32xf32, #tpu.memory_space<vmem>>, %arg10: memref<8x32xf32, #tpu.memory_space<vmem>>) attributes {dimension_semantics = [#tpu.dimension_semantics<parallel>], iteration_bounds = array<i64: 2>, scalar_prefetch = 0 : i64, scratch_operands = 0 : i64, tpu.core_type = #tpu.core_type<tc>, window_params = [{transform_indices = @transform_0, window_bounds = array<i64: 8, 32>}, {pipeline_mode = #tpu.pipeline_mode<synchronous>, transform_indices = @transform_1, window_bounds = array<i64: 32, 32>}, {pipeline_mode = #tpu.pipeline_mode<synchronous>, transform_indices = @transform_2, window_bounds = array<i64: 32, 32>}, {pipeline_mode = #tpu.pipeline_mode<synchronous>, transform_indices = @transform_3, window_bounds = array<i64: 32, 32>}, {pipeline_mode = #tpu.pipeline_mode<synchronous>, transform_indices = @transform_4, window_bounds = array<i64: 1, 32>}, {pipeline_mode = #tpu.pipeline_mode<synchronous>, transform_indices = @transform_5, window_bounds = array<i64: 1, 32>}, {pipeline_mode = #tpu.pipeline_mode<synchronous>, transform_indices = @transform_6, window_bounds = array<i64: 1, 32>}, {transform_indices = @transform_7, window_bounds = array<i64: 8, 32>}, {transform_indices = @transform_8, window_bounds = array<i64: 8, 32>}, {transform_indices = @transform_9, window_bounds = array<i64: 8, 32>}]} {
    %c0 = arith.constant 0 : index
    %c0_0 = arith.constant 0 : index
    %0 = vector.load %arg1[%c0, %c0_0] : memref<8x32xf32, #tpu.memory_space<vmem>>, vector<8x32xf32>
    %c0_1 = arith.constant 0 : index
    %c0_2 = arith.constant 0 : index
    %1 = vector.load %arg2[%c0_1, %c0_2] : memref<32x32xf32, #tpu.memory_space<vmem>>, vector<32x32xf32>
    %cst = arith.constant dense<0.000000e+00> : vector<8x32xf32>
    %2 = tpu.matmul %0, %1, %cst {dimension_numbers = #tpu.dot_dimension_numbers<[1], [0], [0], [1], [0, 0, 1, 1], [], []>} : vector<8x32xf32>, vector<32x32xf32>, vector<8x32xf32> -> vector<8x32xf32>
    %c0_3 = arith.constant 0 : index
    %c0_4 = arith.constant 0 : index
    %3 = vector.load %arg5[%c0_3, %c0_4] : memref<1x32xf32, #tpu.memory_space<vmem>>, vector<1x32xf32>
    %4 = vector.broadcast %3 : vector<1x32xf32> to vector<8x32xf32>
    %5 = arith.addf %2, %4 : vector<8x32xf32>
    %c0_5 = arith.constant 0 : index
    %c0_6 = arith.constant 0 : index
    %6 = vector.load %arg8[%c0_5, %c0_6] : memref<8x32xf32, #tpu.memory_space<vmem>>, vector<8x32xf32>
    tpu.vector_store %arg8[%c0_5, %c0_6], %5 {strides = array<i32>} : memref<8x32xf32, #tpu.memory_space<vmem>>, vector<8x32xf32>,
    %c0_7 = arith.constant 0 : index
    %c0_8 = arith.constant 0 : index
    %7 = vector.load %arg3[%c0_7, %c0_8] : memref<32x32xf32, #tpu.memory_space<vmem>>, vector<32x32xf32>
    %cst_9 = arith.constant dense<0.000000e+00> : vector<8x32xf32>
    %8 = tpu.matmul %0, %7, %cst_9 {dimension_numbers = #tpu.dot_dimension_numbers<[1], [0], [0], [1], [0, 0, 1, 1], [], []>} : vector<8x32xf32>, vector<32x32xf32>, vector<8x32xf32> -> vector<8x32xf32>
    %c0_10 = arith.constant 0 : index
    %c0_11 = arith.constant 0 : index
    %9 = vector.load %arg6[%c0_10, %c0_11] : memref<1x32xf32, #tpu.memory_space<vmem>>, vector<1x32xf32>
    %10 = vector.broadcast %9 : vector<1x32xf32> to vector<8x32xf32>
    %11 = arith.addf %8, %10 : vector<8x32xf32>
    %c0_12 = arith.constant 0 : index
    %c0_13 = arith.constant 0 : index
    %12 = vector.load %arg9[%c0_12, %c0_13] : memref<8x32xf32, #tpu.memory_space<vmem>>, vector<8x32xf32>
    tpu.vector_store %arg9[%c0_12, %c0_13], %11 {strides = array<i32>} : memref<8x32xf32, #tpu.memory_space<vmem>>, vector<8x32xf32>,
    %c0_14 = arith.constant 0 : index
    %c0_15 = arith.constant 0 : index
    %13 = vector.load %arg4[%c0_14, %c0_15] : memref<32x32xf32, #tpu.memory_space<vmem>>, vector<32x32xf32>
    %cst_16 = arith.constant dense<0.000000e+00> : vector<8x32xf32>
    %14 = tpu.matmul %0, %13, %cst_16 {dimension_numbers = #tpu.dot_dimension_numbers<[1], [0], [0], [1], [0, 0, 1, 1], [], []>} : vector<8x32xf32>, vector<32x32xf32>, vector<8x32xf32> -> vector<8x32xf32>
    %c0_17 = arith.constant 0 : index
    %c0_18 = arith.constant 0 : index
    %15 = vector.load %arg7[%c0_17, %c0_18] : memref<1x32xf32, #tpu.memory_space<vmem>>, vector<1x32xf32>
    %16 = vector.broadcast %15 : vector<1x32xf32> to vector<8x32xf32>
    %17 = arith.addf %14, %16 : vector<8x32xf32>
    %c0_19 = arith.constant 0 : index
    %c0_20 = arith.constant 0 : index
    %18 = vector.load %arg10[%c0_19, %c0_20] : memref<8x32xf32, #tpu.memory_space<vmem>>, vector<8x32xf32>
    tpu.vector_store %arg10[%c0_19, %c0_20], %17 {strides = array<i32>} : memref<8x32xf32, #tpu.memory_space<vmem>>, vector<8x32xf32>,
    return
  }
  func.func @transform_0(%arg0: i32) -> (i32, i32) {
    %c0_i32 = arith.constant 0 : i32
    %c0_i32_0 = arith.constant 0 : i32
    return %arg0, %c0_i32 : i32, i32
  }
  func.func @transform_1(%arg0: i32) -> (i32, i32) {
    %c0_i32 = arith.constant 0 : i32
    %c0_i32_0 = arith.constant 0 : i32
    %c0_i32_1 = arith.constant 0 : i32
    return %c0_i32, %c0_i32_0 : i32, i32
  }
  func.func @transform_2(%arg0: i32) -> (i32, i32) {
    %c0_i32 = arith.constant 0 : i32
    %c0_i32_0 = arith.constant 0 : i32
    %c0_i32_1 = arith.constant 0 : i32
    return %c0_i32, %c0_i32_0 : i32, i32
  }
  func.func @transform_3(%arg0: i32) -> (i32, i32) {
    %c0_i32 = arith.constant 0 : i32
    %c0_i32_0 = arith.constant 0 : i32
    %c0_i32_1 = arith.constant 0 : i32
    return %c0_i32, %c0_i32_0 : i32, i32
  }
  func.func @transform_4(%arg0: i32) -> (i32, i32) {
    %c0_i32 = arith.constant 0 : i32
    %c0_i32_0 = arith.constant 0 : i32
    %c0_i32_1 = arith.constant 0 : i32
    return %c0_i32, %c0_i32_0 : i32, i32
  }
  func.func @transform_5(%arg0: i32) -> (i32, i32) {
    %c0_i32 = arith.constant 0 : i32
    %c0_i32_0 = arith.constant 0 : i32
    %c0_i32_1 = arith.constant 0 : i32
    return %c0_i32, %c0_i32_0 : i32, i32
  }
  func.func @transform_6(%arg0: i32) -> (i32, i32) {
    %c0_i32 = arith.constant 0 : i32
    %c0_i32_0 = arith.constant 0 : i32
    %c0_i32_1 = arith.constant 0 : i32
    return %c0_i32, %c0_i32_0 : i32, i32
  }
  func.func @transform_7(%arg0: i32) -> (i32, i32) {
    %c0_i32 = arith.constant 0 : i32
    %c0_i32_0 = arith.constant 0 : i32
    return %arg0, %c0_i32 : i32, i32
  }
  func.func @transform_8(%arg0: i32) -> (i32, i32) {
    %c0_i32 = arith.constant 0 : i32
    %c0_i32_0 = arith.constant 0 : i32
    return %arg0, %c0_i32 : i32, i32
  }
  func.func @transform_9(%arg0: i32) -> (i32, i32) {
    %c0_i32 = arith.constant 0 : i32
    %c0_i32_0 = arith.constant 0 : i32
    return %arg0, %c0_i32 : i32, i32
  }
}

</mosaic_0001>

<bundles_post_ra>
// kernel: tpu_custom_call.1
= control target key start
LH: loop header
LB: loop body
LE: loop exit
PB: predicated region body
PF: predicated region fallthrough
CT: control target
= control target key end

     0   :  { %s1726_s0 = inlined_call_operand.hbm [shape: f32[16,32], index: 0, kind: input, shape index: {}]   ;;  %s1727_s1 = inlined_call_operand.hbm [shape: f32[32,32], index: 1, kind: input, shape index: {}]   ;;  %s1728_s2 = inlined_call_operand.hbm [shape: f32[32,32], index: 2, kind: input, shape index: {}]   ;;  %s1729_s3 = inlined_call_operand.hbm [shape: f32[32,32], index: 3, kind: input, shape index: {}]   ;;  %s1730_s4 = inlined_call_operand.vmem [shape: f32[1,32], index: 4, kind: input, shape index: {}]   ;;  %s1731_s5 = inlined_call_operand.vmem [shape: f32[1,32], index: 5, kind: input, shape index: {}]   ;;  %s1732_s6 = inlined_call_operand.vmem [shape: f32[1,32], index: 6, kind: input, shape index: {}]   ;;  %s1733_s7 = inlined_call_operand.hbm [shape: f32[16,32], index: 7, kind: output, shape index: {0}]   ;;  %s1734_s8 = inlined_call_operand.hbm [shape: f32[16,32], index: 8, kind: output, shape index: {1}]   ;;  %s1735_s9 = inlined_call_operand.hbm [shape: f32[16,32], index: 9, kind: output, shape index: {2}]  }
   0x1   :  { %1743 = sst [smem:[#allocation21_spill]] %s1726_s0 }
   0x2   :  { %1744 = sst [smem:[#allocation22_spill]] %s1735_s9 }
   0x3   :  { %15 = vsyncpa [#allocation3], 0 }
   0x4   :  { %17 = vsyncpa [#allocation3 + $0x1], 0 }
   0x5   :  { %18 = vsyncpa [#allocation6], 0 }
   0x6   :  { %19 = vsyncpa [#allocation9], 0 }
   0x7   :  { %20 = vsyncpa [#allocation4], 0 }
   0x8   :  { %22 = vsyncpa [#allocation4 + $0x1], 0 }
   0x9   :  { %23 = vsyncpa [#allocation12], 0 }
   0xa   :  { %25 = vsyncpa [#allocation12 + $0x1], 0  ;;  %s1371_s30 = smov 0   ;;  %s1373_s10 = smov 0  }
   0xb   :  { %s1375_s11 = smov 0   ;;  %s1377_s12 = smov 0  }
   0xc LB: > { %1745 = sst [smem:[#allocation19_spill]] %s1295_s30  ;;  %s1392_s13 = sadd.s32 4294967295, %s1307_s12   ;;  %s1307_s12 = sphi %s1377_s12, %s1772_s12   ;;  %s1303_s11 = sphi %s1375_s11, %s1771_s11   ;;  %s1299_s10 = sphi %s1373_s10, %s1770_s10   ;;  %s1295_s30 = sphi %s1371_s30, %s1769_s30  }
   0xd   : > { %s1737_s14 = sadd.s32 4294967294, %s1307_s12   ;;  %p51_p0 = scmp.ne.s32.totalorder %s1299_s10, %s1295_s30 }
   0xe   : > { %p1736_p1 = scmp.eq.s32.totalorder %s1392_s13, 0  ;;  %p207_p3 = scmp.eq.s32.totalorder %s1737_s14, 1 }
   0xf   : > { %p872_p5 = scmp.ge.s32.totalorder %s1307_s12, 1  ;;  %p266_p7 = scmp.lt.s32.totalorder %s1307_s12, 3 }
  0x10   : > { %p1403_p4 = por %p1736_p1, %p51_p0  ;;  %p1408_p6 = por %p207_p3, %p51_p0 }
  0x11   : > { %p1413_p8 = pnand %p872_p5, %p266_p7  ;;  %s1309_s18 = smov [#allocation5]  }
  0x12   : > { %s1746_s15 = scalar_select %p1403_p4, 1, 0 }
  0x13   : > { %s1747_s16 = scalar_select %p1408_p6, 1, 0 }
  0x14   : > { %s1749_s17 = scalar_select %p1413_p8, 1, 0 }
  0x15   : > { %1748 = sst [smem:[#allocation20_spill]] %s1747_s16  ;;  %s278_s19 = sshll.u32 %s1309_s18, 4  ;;  %s1417_s19 = int_to_ptr.vmem [resolvable:$true] %s278_s19 }
  0x16   : > { %p987_p9 = pneg %p1413_p8  ;;  %s1310_s21 = smov [#allocation7]  }
  0x17   : > { %s291_s22 = sshll.u32 %s1310_s21, 4  ;;  %s1311_s23 = smov [#allocation8]   ;;  %s1428_s22 = int_to_ptr.vmem [resolvable:$true] %s291_s22 }
  0x18   : > { %p1424_p11 = pnand %p987_p9, %p1736_p1  ;;  %s1430_s24 = sshll.u32 %s1311_s23, 4  ;;  %s305_s24 = int_to_ptr.vmem [resolvable:$true] %s1430_s24 }
  0x19   : > { %s1059_s27 = scalar_lea.hbm %s1727_s1, 512 }
  0x1a   : > { %p1060_p12 = scmp.ne.s32.totalorder %s1727_s1, %s1059_s27  ;;  %p1440_p13 = pneg %p1424_p11 }
  0x1b   : > { %p1066_p5 = scmp.lt.u32.totalorder %s1059_s27, %s1727_s1 }
  0x1c   : > { %p1062_p0 = pnand %p1440_p13, %p1060_p12 }
  0x1e   : > { %p1063_p3 = pneg %p1062_p0 }
  0x20   : > { %p1068_p7 = pnand %p1066_p5, %p1063_p3 }
  0x22   : > { %1071 = shalt.err (!%p1068_p7)
}
  0x23   : > { %s1072_s25 = scalar_lea.vmem %s1417_s19, 512  ;;  %p1080_p2 = scmp.lt.s32.totalorder %s1417_s19, %s1417_s19 }
  0x24   : > { %p1073_p9 = scmp.ne.s32.totalorder %s1417_s19, %s1072_s25  ;;  %p1081_p6 = scmp.lt.s32.totalorder %s1072_s25, %s1072_s25 }
  0x26   : > { %p1075_p10 = pnand %p1073_p9, %p1440_p13  ;;  %p1082_p12 = por %p1081_p6, %p1080_p2 }
  0x28   : > { %p1076_p1 = pneg %p1075_p10 }
  0x2a   : > { %p1083_p0 = pnand %p1082_p12, %p1076_p1 }
  0x2c   : > { %1086 = shalt.err (!%p1083_p0)
}
  0x2d   : > { %s1312_s26 = smov 128   ;;  %s1313_s27 = smov 8  }
  0x2e   : > { %990 = dma.hbm_to_vmem [thread:$0]  (!%p1424_p11), %s1727_s1, 512, %s1417_s19, [#allocation6], %s1312_s26, %s1312_s26, %s1313_s27  }
  0x2f   : > { %s1087_s25 = scalar_lea.hbm %s1728_s2, 512 }
  0x30   : > { %p1088_p1 = scmp.ne.s32.totalorder %s1728_s2, %s1087_s25  ;;  %p1094_p10 = scmp.lt.u32.totalorder %s1087_s25, %s1728_s2 }
  0x32   : > { %p1090_p2 = pnand %p1088_p1, %p1440_p13 }
  0x34   : > { %p1091_p6 = pneg %p1090_p2 }
  0x36   : > { %p1096_p3 = pnand %p1094_p10, %p1091_p6 }
  0x38   : > { %1099 = shalt.err (!%p1096_p3)
}
  0x39   : > { %s1100_s19 = scalar_lea.vmem %s1428_s22, 512  ;;  %p1108_p12 = scmp.lt.s32.totalorder %s1428_s22, %s1428_s22 }
  0x3a   : > { %p1101_p5 = scmp.ne.s32.totalorder %s1428_s22, %s1100_s19  ;;  %p1109_p0 = scmp.lt.s32.totalorder %s1100_s19, %s1100_s19 }
  0x3c   : > { %p1103_p7 = pnand %p1101_p5, %p1440_p13  ;;  %p1110_p1 = por %p1109_p0, %p1108_p12 }
  0x3e   : > { %p1104_p9 = pneg %p1103_p7 }
  0x40   : > { %p1111_p2 = pnand %p1110_p1, %p1104_p9 }
  0x42   : > { %1114 = shalt.err (!%p1111_p2)
}
  0x43   : > { %993 = dma.hbm_to_vmem [thread:$0]  (!%p1424_p11), %s1728_s2, 512, %s1428_s22, [#allocation6], %s1312_s26, %s1312_s26, %s1313_s27  }
  0x44   : > { %s1115_s28 = scalar_lea.hbm %s1729_s3, 512 }
  0x45   : > { %p1116_p6 = scmp.ne.s32.totalorder %s1729_s3, %s1115_s28  ;;  %p1122_p5 = scmp.lt.u32.totalorder %s1115_s28, %s1729_s3 }
  0x47   : > { %p1118_p10 = pnand %p1116_p6, %p1440_p13 }
  0x49   : > { %p1119_p3 = pneg %p1118_p10 }
  0x4b   : > { %p1124_p7 = pnand %p1122_p5, %p1119_p3 }
  0x4d   : > { %1127 = shalt.err (!%p1124_p7)
}
  0x4e   : > { %s1128_s19 = scalar_lea.vmem %s305_s24, 512  ;;  %p1136_p1 = scmp.lt.s32.totalorder %s305_s24, %s305_s24 }
  0x4f   : > { %p1129_p9 = scmp.ne.s32.totalorder %s305_s24, %s1128_s19  ;;  %p1137_p2 = scmp.lt.s32.totalorder %s1128_s19, %s1128_s19 }
  0x51   : > { %p1131_p12 = pnand %p1129_p9, %p1440_p13  ;;  %p1138_p4 = por %p1137_p2, %p1136_p1 }
  0x53   : > { %p1132_p0 = pneg %p1131_p12 }
  0x55   : > { %p1139_p8 = pnand %p1138_p4, %p1132_p0 }
  0x57   : > { %1142 = shalt.err (!%p1139_p8)
}
  0x58   : > { %996 = dma.hbm_to_vmem [thread:$0]  (!%p1424_p11), %s1729_s3, 512, %s305_s24, [#allocation9], %s1312_s26, %s1312_s26, %s1313_s27  }
  0x59   : > { %s1513_s18 = sadd.s32 1, %s1307_s12   ;;  %s38_s30 = sadd.s32 1, %s1303_s11 }
  0x5a   : > { %s35_s20 = ssub.s32 %s1307_s12, %s1513_s18  ;;  %p45_p8 = scmp.ne.s32.totalorder %s1303_s11, %s1299_s10 }
  0x5b   : > { %p36_p4 = scmp.eq.s32.totalorder %s35_s20, 0  ;;  %p46_p13 = scmp.eq.s32.totalorder %s1307_s12, 0 }
  0x5c   : > { %p1014_p6 = scmp.lt.s32.totalorder %s1307_s12, 2  ;;  %p1752_p3 = scmp.eq.s32.totalorder %s1392_s13, 1 }
  0x5d   : > { %s1523_s14 = scalar_select %p36_p4, %s1303_s11, %s38_s30  }
  0x5e   : > { %p47_p10 = por %p46_p13, %p45_p8  ;;  %p1527_p5 = por %p1752_p3, %p45_p8 }
  0x5f   : > { %s327_s28 = sand.u32 1, %s1303_s11   ;;  %s878_s29 = sshll.u32 %s1307_s12, 7 }
  0x60   : > { %s877_s24 = sshll.u32 %s327_s28, 3  ;;  %s1754_s0 = sld [smem:[#allocation21_spill]] }
  0x61   : > { %s331_s23 = scalar_lea.vmem [#allocation2], %s877_s24  ;;  %p1538_p11 = pnand %p1014_p6, %p47_p10 }
  0x62   : > { %s338_s25 = sshll.u32 %s331_s23, 4  ;;  %s328_s22 = scalar_lea.sflag [#allocation3], %s327_s28  ;;  %s1542_s25 = int_to_ptr.vmem [resolvable:$true] %s338_s25 }
  0x63   : > { %p1145_p9 = pneg %p1538_p11 }
  0x66   : > { %s1536_s21 = scalar_lea.hbm %s1754_s0, %s878_s29  ;;  %s1148_s29 = scalar_lea.hbm %s1754_s0, 256 }
  0x67   : > { %s1143_s9 = scalar_lea.hbm %s1536_s21, 128  ;;  %p1149_p1 = scmp.lt.u32.totalorder %s1536_s21, %s1754_s0 }
  0x68   : > { %p1144_p7 = scmp.ne.s32.totalorder %s1536_s21, %s1143_s9  ;;  %p1150_p2 = scmp.lt.u32.totalorder %s1148_s29, %s1143_s9 }
  0x69   : > { %p1152_p8 = scmp.lt.u32.totalorder %s1143_s9, %s1536_s21 }
  0x6a   : > { %p1146_p12 = pnand %p1145_p9, %p1144_p7  ;;  %p1151_p4 = por %p1150_p2, %p1149_p1 }
  0x6c   : > { %p1147_p0 = pneg %p1146_p12  ;;  %p1153_p13 = por %p1152_p8, %p1151_p4 }
  0x6e   : > { %p1154_p6 = pnand %p1153_p13, %p1147_p0 }
  0x70   : > { %1157 = shalt.err (!%p1154_p6)
}
  0x71   : > { %s1158_s28 = scalar_lea.vmem %s1542_s25, 128  ;;  %s1314_s27 = smov [#allocation2]  }
  0x72   : > { %p1159_p10 = scmp.ne.s32.totalorder %s1542_s25, %s1158_s28  ;;  %s1163_s23 = sshll.u32 %s1314_s27, 4  ;;  %s1164_s23 = int_to_ptr.vmem [resolvable:$false] %s1163_s23 }
  0x73   : > { %s1165_s20 = scalar_lea.vmem %s1164_s23, 256  ;;  %p1166_p12 = scmp.lt.s32.totalorder %s1542_s25, %s1164_s23 }
  0x74   : > { %p1161_p3 = pnand %p1159_p10, %p1145_p9  ;;  %p1167_p1 = scmp.lt.s32.totalorder %s1165_s20, %s1158_s28 }
  0x76   : > { %p1162_p7 = pneg %p1161_p3  ;;  %p1168_p2 = por %p1167_p1, %p1166_p12 }
  0x78   : > { %p1169_p4 = pnand %p1168_p2, %p1162_p7 }
  0x7a   : > { %1172 = shalt.err (!%p1169_p4)
}
  0x7b   : > { %1000 = dma.hbm_to_vmem [thread:$0]  (!%p1538_p11), %s1536_s21, 128, %s1542_s25, %s328_s22  }
  0x7c   : > { %p1756_p0 = scmp.ne.s32.totalorder %s1749_s17, 0 }
  0x7d   : > { %s1572_s9 = sand.u32 (!%p1756_p0), 1, %s1299_s10   ;;  %p1757_p9 = scmp.ne.s32.totalorder (!%p1756_p0), %s1746_s15, 0 }
  0x7e   : > { %347 = sbr.rel (%p1756_p0) target bundleno = 429 (0x1ad), region = 48  ;;  %s1575_s30 = sshll.u32 (!%p1756_p0), %s1572_s9, 3 }
  0x7f   : > { %s350_s29 = scalar_lea.sflag (!%p1756_p0), [#allocation3], %s1572_s9  ;;  %s353_s24 = scalar_lea.vmem (!%p1756_p0), [#allocation2], %s1575_s30 }
  0x85   : > { %1274 = dma.done.wait (%p1757_p9), %s350_s29, 128  }
  0x86   : > { %1276 = vsyncadd (%p1757_p9), %s350_s29, 4294967168  ;;  %p1758_p11 = scmp.eq.s32.totalorder %s1392_s13, 0 }
  0x88   : > { %1278 = dma.done.wait (%p1758_p11), [#allocation6], 1024   ;;  %p1759_p8 = pmov %p1758_p11 }
  0x8a   : > { %1280 = vsyncadd (%p1759_p8), [#allocation6], 4294966272  ;;  %p1760_p13 = pmov %p1759_p8 }
  0x8b   : > { %p1761_p6 = pmov %p1759_p8 }
  0x8c   : > { %1282 = dma.done.wait (%p1760_p13), [#allocation9], 512  }
  0x8d   : > { %1284 = vsyncadd (%p1761_p6), [#allocation9], 4294966784  ;;  %v1315_v0 = vmov 0.0|0.0   ;;  %vm1316_vm0 = vmmov 0   ;;  %v1317_v1 = vmov 0.0   ;;  %v411_v2 = vld [vmem:[#allocation5] sm:$0xff] }
  0x8e   : > { %949 = vmatprep.subr.bf16.mxu0 %v1315_v0  ;;  %955 = vmatprep.subr.bf16.mxu1 %v1315_v0  ;;  %v412_v3 = vld [vmem:[#allocation5 + $0x8] sm:$0xff]  ;;  %v413_v4 = vld [vmem:[#allocation5 + $0x10] sm:$0xff]  ;;  %v414_v6 = vld [vmem:[#allocation5 + $0x18] sm:$0xff]  ;;  %vm422_vm1 = vcmask 261120   ;;  %s1604_s25 = sshll.u32 %s1392_s13, 7  ;;  %s395_s19 = scalar_lea.vmem [#allocation10], %s1575_s30 }
  0x8f   : > { %924 = vmatprep.mubr.msk.f32.mxu0 %vm1316_vm0, %v1317_v1  ;;  %935 = vmatprep.mubr.msk.f32.mxu1 %vm1316_vm0, %v1317_v1  ;;  %v950_v5 = vpack.c.bf16 %v412_v3, %v411_v2  ;;  %v497_v7 = vld [vmem:[#allocation7] sm:$0xff]  ;;  %v498_v8 = vld [vmem:[#allocation7 + $0x8] sm:$0xff]  ;;  %v953_v10 = vpack.c.bf16 %v414_v6, %v413_v4  ;;  %v499_v11 = vld [vmem:[#allocation7 + $0x10] sm:$0xff]  ;;  %s685_s22 = sshll.u32 %s395_s19, 4  ;;  %s402_s27 = scalar_lea.vmem [#allocation11], %s1575_s30  ;;  %s1617_s22 = int_to_ptr.vmem [resolvable:$true] %s685_s22 }
  0x90   : > { %v956_v9 = vpack.c.bf16 %v498_v8, %v497_v7  ;;  %v500_v12 = vld [vmem:[#allocation7 + $0x18] sm:$0xff]  ;;  %v579_v13 = vld [vmem:[#allocation8] sm:$0xff]  ;;  %v580_v14 = vld [vmem:[#allocation8 + $0x8] sm:$0xff]  ;;  %s698_s23 = sshll.u32 %s402_s27, 4  ;;  %s1623_s26 = scalar_lea.hbm %s1734_s8, %s1604_s25  ;;  %s1625_s23 = int_to_ptr.vmem [resolvable:$true] %s698_s23 }
  0x91   : > { %951 = vmatpush3.bf16.msra.mxu0 %v950_v5  ;;  %v959_v15 = vpack.c.bf16 %v500_v12, %v499_v11  ;;  %v410_v16 = vld [vmem:[%s353_s24] sm:$0xff]  ;;  %v962_v17 = vpack.c.bf16 %v580_v14, %v579_v13  ;;  %s1615_s24 = scalar_lea.hbm %s1733_s7, %s1604_s25  ;;  %s662_s28 = scalar_lea.sflag [#allocation4], %s1572_s9 }
  0x92   : > { %952 = vmatprep.subr.bf16.mxu0 %v1315_v0  ;;  %957 = vmatpush3.bf16.msra.mxu1 %v956_v9  ;;  %v581_v18 = vld [vmem:[#allocation8 + $0x10] sm:$0xff]  ;;  %v582_v19 = vld [vmem:[#allocation8 + $0x18] sm:$0xff]  ;;  %s1173_s20 = scalar_lea.vmem %s1617_s22, 128  ;;  %s1318_s29 = smov [#allocation10]  }
  0x93   : > { %958 = vmatprep.subr.bf16.mxu1 %v1315_v0  ;;  %v965_v20 = vpack.c.bf16 %v582_v19, %v581_v18  ;;  %v887_v21 = vld [vmem:[%s1730_s4] ss:$0 sm:$0xff]  ;;  %p1174_p10 = scmp.ne.s32.totalorder %s1617_s22, %s1173_s20  ;;  %s1177_s15 = sshll.u32 %s1318_s29, 4  ;;  %s1178_s15 = int_to_ptr.vmem [resolvable:$false] %s1177_s15 }
  0x94   : > { %v889_v22 = vld [vmem:[%s1731_s5] ss:$0 sm:$0xff]  ;;  %s1179_s0 = scalar_lea.vmem %s1178_s15, 256  ;;  %p1180_p12 = scmp.lt.s32.totalorder %s1617_s22, %s1178_s15 }
  0x95   : > { %954 = vmatpush3.bf16.msra.mxu0 %v953_v10  ;;  %p1175_p3 = pnand %p1174_p10, %p1527_p5  ;;  %p1181_p1 = scmp.lt.s32.totalorder %s1179_s0, %s1173_s20 }
  0x96   : > { %961 = vmatprep.subr.bf16.mxu0 %v1315_v0  ;;  %960 = vmatpush3.bf16.msra.mxu1 %v959_v15 }
  0x97   : > { %p1176_p7 = pneg %p1175_p3  ;;  %p1182_p2 = por %p1181_p1, %p1180_p12 }
  0x98   : > { %925 = vmatmul.mubr.msk.f32.vlgmr.msra.gmra.mrb[0].mxu0 %vm422_vm1, %v410_v16 }
  0x99   : > { %963 = vmatpush3.bf16.msra.mxu0 %v962_v17  ;;  %936 = vmatmul.mubr.msk.f32.vlgmr.msra.gmra.mrb[0].mxu1 %vm422_vm1, %v410_v16  ;;  %p1183_p4 = pnand %p1182_p2, %p1176_p7 }
  0x9a   : > { %964 = vmatprep.subr.bf16.mxu0 %v1315_v0  ;;  %946 = vmatprep.mubr.msk.f32.mxu0 %vm1316_vm0, %v1317_v1 }
  0x9d   : > { %966 = vmatpush3.bf16.msra.mxu0 %v965_v20 }
  0xa0   : > { %947 = vmatmul.mubr.msk.f32.vlgmr.msra.gmra.mrb[2].mxu0 %vm422_vm1, %v410_v16 }
 0x16b   : > { %v492_v23 = vpop.f32.mrb[0].mxu0 }
 0x16c   : > { %v493_v24 = vadd.f32 %v887_v21, %v492_v23  ;;  %v926_v25 = vpop.f32.mrb[1].mxu0  ;;  %v574_v26 = vpop.f32.mrb[0].mxu1 }
 0x16d   : > { %v575_v27 = vadd.f32 %v889_v22, %v574_v26  ;;  %v937_v28 = vpop.f32.mrb[1].mxu1 }
 0x16e   : > { %496 = vst.msk [vmem:[%s395_s19] sm:$0xff] %vm422_vm1, %v493_v24 }
 0x16f   : > { %578 = vst.msk [vmem:[%s402_s27] sm:$0xff] %vm422_vm1, %v575_v27 }
 0x170   : > { %1186 = shalt.err (!%p1183_p4)
}
 0x171   : > { %s1187_s9 = scalar_lea.hbm %s1615_s24, 128  ;;  %s1191_s17 = scalar_lea.hbm %s1733_s7, 256 }
 0x172   : > { %p1188_p0 = scmp.ne.s32.totalorder %s1615_s24, %s1187_s9  ;;  %p1192_p8 = scmp.lt.u32.totalorder %s1615_s24, %s1733_s7 }
 0x173   : > { %p1193_p13 = scmp.lt.u32.totalorder %s1191_s17, %s1187_s9  ;;  %p1195_p10 = scmp.lt.u32.totalorder %s1187_s9, %s1615_s24 }
 0x174   : > { %p1189_p9 = pnand %p1188_p0, %p1527_p5 }
 0x175   : > { %p1194_p6 = por %p1193_p13, %p1192_p8 }
 0x176   : > { %p1190_p11 = pneg %p1189_p9 }
 0x177   : > { %p1196_p3 = por %p1195_p10, %p1194_p6 }
 0x179   : > { %p1197_p7 = pnand %p1196_p3, %p1190_p11 }
 0x17b   : > { %1200 = shalt.err (!%p1197_p7)
}
 0x17c   : > { %981 = dma.vmem_to_hbm [thread:$0]  (%p1527_p5), %s1617_s22, 128, %s1615_s24, %s662_s28  }
 0x17d   : > { %s1762_s0 = sand.u32 1, %s1392_s13   ;;  %s1201_s29 = scalar_lea.vmem %s1625_s23, 128 }
 0x17e   : > { %s1653_s20 = scalar_lea.sflag [#allocation12], %s1762_s0  ;;  %p1202_p12 = scmp.ne.s32.totalorder %s1625_s23, %s1201_s29 }
 0x17f   : > { %s1319_s9 = smov [#allocation11]  }
 0x180   : > { %p1203_p1 = pnand %p1202_p12, %p1527_p5  ;;  %s1205_s19 = sshll.u32 %s1319_s9, 4  ;;  %s1206_s19 = int_to_ptr.vmem [resolvable:$false] %s1205_s19 }
 0x181   : > { %s1207_s27 = scalar_lea.vmem %s1206_s19, 256  ;;  %p1208_p4 = scmp.lt.s32.totalorder %s1625_s23, %s1206_s19 }
 0x182   : > { %p1204_p2 = pneg %p1203_p1  ;;  %p1209_p0 = scmp.lt.s32.totalorder %s1207_s27, %s1201_s29 }
 0x184   : > { %p1210_p9 = por %p1209_p0, %p1208_p4 }
 0x186   : > { %p1211_p11 = pnand %p1210_p9, %p1204_p2 }
 0x188   : > { %1214 = shalt.err (!%p1211_p11)
}
 0x189   : > { %s1215_s13 = scalar_lea.hbm %s1623_s26, 128  ;;  %s1219_s28 = scalar_lea.hbm %s1734_s8, 256 }
 0x18a   : > { %p1216_p8 = scmp.ne.s32.totalorder %s1623_s26, %s1215_s13  ;;  %p1220_p10 = scmp.lt.u32.totalorder %s1623_s26, %s1734_s8 }
 0x18b   : > { %p1221_p3 = scmp.lt.u32.totalorder %s1219_s28, %s1215_s13  ;;  %p1223_p12 = scmp.lt.u32.totalorder %s1215_s13, %s1623_s26 }
 0x18c   : > { %p1217_p13 = pnand %p1216_p8, %p1527_p5 }
 0x18d   : > { %p1222_p7 = por %p1221_p3, %p1220_p10 }
 0x18e   : > { %p1218_p6 = pneg %p1217_p13 }
 0x18f   : > { %p1224_p1 = por %p1223_p12, %p1222_p7 }
 0x191   : > { %p1225_p2 = pnand %p1224_p1, %p1218_p6 }
 0x193   : > { %1228 = shalt.err (!%p1225_p2)
}
 0x194   : > { %982 = dma.vmem_to_hbm [thread:$0]  (%p1527_p5), %s1625_s23, 128, %s1623_s26, %s1653_s20   ;;  %v891_v29 = vld [vmem:[%s1732_s6] ss:$0 sm:$0xff]  ;;  %v656_v30 = vpop.f32.mrb[2].mxu0 }
 0x195   : > { %s409_s29 = scalar_lea.vmem [#allocation13], %s1575_s30  ;;  %v657_v31 = vadd.f32 %v891_v29, %v656_v30  ;;  %v948_v32 = vpop.f32.mrb[3].mxu0  ;;  %s1763_s13 = sld [smem:[#allocation22_spill]] }
 0x196   : > { %s711_s9 = sshll.u32 %s409_s29, 4  ;;  %s1320_s23 = smov [#allocation13]   ;;  %s712_s9 = int_to_ptr.vmem [resolvable:$true] %s711_s9 }
 0x197   : > { %660 = vst.msk [vmem:[%s409_s29] sm:$0xff] %vm422_vm1, %v657_v31  ;;  %s1229_s24 = scalar_lea.vmem %s712_s9, 128  ;;  %s1233_s26 = sshll.u32 %s1320_s23, 4  ;;  %s1234_s26 = int_to_ptr.vmem [resolvable:$false] %s1233_s26 }
 0x198   : > { %p1230_p4 = scmp.ne.s32.totalorder %s712_s9, %s1229_s24  ;;  %s1235_s30 = scalar_lea.vmem %s1234_s26, 256 }
 0x199   : > { %p1236_p11 = scmp.lt.s32.totalorder %s712_s9, %s1234_s26  ;;  %p1237_p8 = scmp.lt.s32.totalorder %s1235_s30, %s1229_s24 }
 0x19a   : > { %p1231_p0 = pnand %p1230_p4, %p1527_p5 }
 0x19b   : > { %s1685_s22 = scalar_lea.hbm %s1763_s13, %s1604_s25  ;;  %p1238_p13 = por %p1237_p8, %p1236_p11 }
 0x19c   : > { %p1232_p9 = pneg %p1231_p0 }
 0x19e   : > { %p1239_p6 = pnand %p1238_p13, %p1232_p9 }
 0x1a0   : > { %1242 = shalt.err (!%p1239_p6)
}
 0x1a1   : > { %s1243_s25 = scalar_lea.hbm %s1685_s22, 128  ;;  %s1247_s21 = scalar_lea.hbm %s1763_s13, 256 }
 0x1a2   : > { %p1244_p10 = scmp.ne.s32.totalorder %s1685_s22, %s1243_s25  ;;  %p1248_p12 = scmp.lt.u32.totalorder %s1685_s22, %s1763_s13 }
 0x1a3   : > { %p1249_p1 = scmp.lt.u32.totalorder %s1247_s21, %s1243_s25  ;;  %p1251_p4 = scmp.lt.u32.totalorder %s1243_s25, %s1685_s22 }
 0x1a4   : > { %p1245_p3 = pnand %p1244_p10, %p1527_p5 }
 0x1a5   : > { %p1250_p2 = por %p1249_p1, %p1248_p12 }
 0x1a6   : > { %p1246_p7 = pneg %p1245_p3 }
 0x1a7   : > { %p1252_p0 = por %p1251_p4, %p1250_p2 }
 0x1a9   : > { %p1253_p9 = pnand %p1252_p0, %p1246_p7 }
 0x1ab   : > { %1256 = shalt.err (!%p1253_p9)
}
 0x1ac   : > { %983 = dma.vmem_to_hbm [thread:$0]  (%p1527_p5), %s712_s9, 128, %s1685_s22, %s1653_s20  }
 0x1ad PF: > { %s1764_s29 = sld [smem:[#allocation19_spill]]  ;;  %s1765_s19 = sld [smem:[#allocation20_spill]] }
 0x1ae   : > { %p1767_p8 = scmp.ge.s32.totalorder %s1307_s12, 2 }
 0x1b3   : > { %s723_s27 = sand.u32 1, %s1764_s29   ;;  %p1766_p11 = scmp.ne.s32.totalorder %s1765_s19, 0 }
 0x1b4   : > { %s724_s24 = scalar_lea.sflag [#allocation4], %s723_s27 }
 0x1b5   : > { %p1002_p13 = pnand %p1767_p8, %p1766_p11 }
 0x1b7   : > { %1286 = dma.done.wait (!%p1002_p13), %s724_s24, 128  }
 0x1b8   : > { %1288 = vsyncadd (!%p1002_p13), %s724_s24, 4294967168  ;;  %s1768_s23 = sadd.s32 4294967294, %s1307_s12  }
 0x1b9   : > { %s732_s26 = sand.u32 1, %s1768_s23  }
 0x1ba   : > { %s733_s30 = scalar_lea.sflag [#allocation12], %s732_s26 }
 0x1bb   : > { %1290 = dma.done.wait (!%p1002_p13), %s733_s30, 256  }
 0x1bc   : > { %1292 = vsyncadd (!%p1002_p13), %s733_s30, 4294967040  ;;  %p28_p5 = scmp.ge.s32.totalorder %s1513_s18, 4   ;;  %s1769_s30 = smov %s1299_s10 }
 0x1bd   : > { %s1770_s10 = smov %s1303_s11  ;;  %s1771_s11 = smov %s1523_s14 }
 0x1be   : > { %s1772_s12 = smov %s1513_s18  ;;  %30 = sbr.rel (!%p28_p5) target bundleno = 12 (0xc), region = 137 }
 0x1c5   :  { %747 = vsyncpa [#allocation3], 1 }
 0x1c6   :  { %749 = vsyncpa [#allocation3 + $0x1], 1 }
 0x1c7   :  { %750 = vsyncpa [#allocation6], 1 }
 0x1c8   :  { %751 = vsyncpa [#allocation9], 1 }
 0x1c9   :  { %752 = vsyncpa [#allocation4], 1 }
 0x1ca   :  { %754 = vsyncpa [#allocation4 + $0x1], 1 }
 0x1cb   :  { %755 = vsyncpa [#allocation12], 1 }
 0x1cc   :  { %757 = vsyncpa [#allocation12 + $0x1], 1 }

</bundles_post_ra>
